<compile_context>
chip_gen: v5e
topology: v5e:2x2
jax: 0.10.0
libtpu: 0.0.40
codegen_flags: <defaults>
</compile_context>

<pallas_src>
import functools

import jax
import jax.numpy as jnp
from jax.experimental import pallas as pl
from jax.experimental.pallas import tpu as pltpu


def convexnet_kernel(x_ref, wenv_ref, benv_ref, wn_ref, bn_ref,
                     pooled_ref, out_ref, acc_ref, *,
                     inv_hw, num_nodes, c_out, lane_chunks):
    # x_ref:      [Bt, C0, hw_tile]  (native input dtype)
    # wenv_ref:   [C0, N]            benv_ref: [1, N]
    # wn_ref:     [C0, N*C1]         bn_ref:   [1, N*C1]
    # pooled_ref: [Bt, 1, C0]        out_ref:  [Bt, 1, C1]
    # acc_ref:    [Bt, C0, 128] f32 scratch (lane-wide partial sums)
    k = pl.program_id(1)

    @pl.when(k == 0)
    def _init():
        acc_ref[...] = jnp.zeros_like(acc_ref)

    # Streaming partial global-average-pool: aligned 128-lane column adds only
    # (pure VPU work under the DMA shadow); no per-step XLU reduce.
    x = x_ref[...].astype(jnp.float32)                    # [Bt, C0, hw_tile]
    acc = acc_ref[...]
    for j in range(lane_chunks):                          # static, aligned slices
        acc = acc + x[:, :, j * 128:(j + 1) * 128]
    acc_ref[...] = acc

    @pl.when(k == pl.num_programs(1) - 1)
    def _finalize():
        # Single lane-axis (XLU) reduce, once per batch block.
        pooled = jnp.sum(acc_ref[...], axis=-1) * inv_hw              # [Bt, C0]
        pooled_ref[...] = pooled[:, None, :].astype(pooled_ref.dtype)

        # env_linear + softmax -> convex weights alpha (exact division: off the
        # hot path, keeps sum(alpha) == 1).
        logits = jnp.dot(pooled, wenv_ref[...],
                         preferred_element_type=jnp.float32) + benv_ref[...]
        m = jnp.max(logits, axis=-1, keepdims=True)
        e = jnp.exp(logits - m)
        alpha = e / jnp.sum(e, axis=-1, keepdims=True)                # [Bt, N]

        # Single fused, lane-dense matmul for all node linears: [Bt, N*C1].
        nodes = jnp.dot(pooled, wn_ref[...],
                        preferred_element_type=jnp.float32) + bn_ref[...]

        # Convex combination (N is small & static; epilogue-only).
        out = jnp.zeros((pooled.shape[0], c_out), jnp.float32)
        for n in range(num_nodes):
            out = out + alpha[:, n:n + 1] * nodes[:, n * c_out:(n + 1) * c_out]
        out_ref[...] = out[:, None, :].astype(out_ref.dtype)


def _pick_tiles(B, C0, HW, itemsize, max_block_bytes):
    """Byte-based tile picker. Returns (batch_tile, hw_tile)."""
    hw128 = ((HW + 127) // 128) * 128
    target = min(2 << 20, max_block_bytes)            # ~2 MiB x-block target
    row_bytes = C0 * hw128 * itemsize                 # one (padded) batch row

    if row_bytes >= target:
        # Large HW: tile the HW axis, one batch row per block.
        lanes = max(128, (target // max(C0 * itemsize, 1)) // 128 * 128)
        return 1, int(min(lanes, hw128))

    # Small HW: fold batch rows, full (padded) HW per block. Keep >= 2 batch
    # blocks when B >= 2 so both v7x TensorCores get work.
    bt_cap = B if B == 1 else max(1, B // 2)
    bt_desired = max(1, min(bt_cap, target // max(row_bytes, 1)))
    bt = max(d for d in range(1, bt_desired + 1) if B % d == 0)
    return int(bt), int(hw128)


def convexnet_forward(x_nchw, w_env, b_env, w_nodes, b_nodes, *,
                      hw_tile=None, batch_tile=None):
    """x_nchw: [B, C0, H, W] (any float dtype). Returns (pooled [B,C0,1,1], out [B,C1])."""
    B, C0, H, W = x_nchw.shape
    N, _, C1 = w_nodes.shape
    HW = H * W
    itemsize = jnp.dtype(x_nchw.dtype).itemsize

    # Resident f32 weights (double-buffered by default -> budget 2x).
    weight_bytes = 4 * (C0 * N + N + C0 * N * C1 + N * C1)

    # Per-chip VMEM budget (v5e/v6e: 128 MiB physical, v7x: 64 MiB).
    try:
        phys_vmem = int(pltpu.get_tpu_info().vmem_capacity_bytes)
    except Exception:
        phys_vmem = 64 << 20                          # conservative fallback (v7x)
    usable = int(phys_vmem * 0.6)                     # headroom for compiler temps
    max_block_bytes = max(128 * C0 * itemsize,
                          (usable - 2 * weight_bytes - (1 << 20)) // 2)

    auto_bt, auto_tile = _pick_tiles(B, C0, HW, itemsize, max_block_bytes)
    bt = batch_tile if batch_tile is not None else auto_bt
    tile = hw_tile if hw_tile is not None else auto_tile
    assert tile % 128 == 0, "hw_tile must be a multiple of 128 lanes"
    assert B % bt == 0, "batch_tile must divide B"

    # Zero lane-padding so tile | HW (zeros don't affect the sum; divide by true HW).
    # TODO(synk): padding copies x once; a masked last tile would avoid that copy.
    hw_padded = ((HW + tile - 1) // tile) * tile
    x = x_nchw.reshape(B, C0, HW)
    if hw_padded != HW:
        x = jnp.pad(x, ((0, 0), (0, 0), (0, hw_padded - HW)))
    k_steps = hw_padded // tile

    # Fuse the per-node linears into one lane-dense weight matrix [C0, N*C1].
    wn_flat = jnp.transpose(w_nodes, (1, 0, 2)).reshape(C0, N * C1).astype(jnp.float32)
    bn_flat = b_nodes.reshape(1, N * C1).astype(jnp.float32)

    block_bytes = bt * C0 * tile * itemsize
    acc_bytes = bt * C0 * 128 * 4
    vmem_limit = int(min(max(2 * block_bytes + 2 * weight_bytes + acc_bytes + (2 << 20),
                             32 << 20),
                         phys_vmem))

    cost = pl.CostEstimate(
        flops=B * C0 * hw_padded + 2 * B * C0 * N + 2 * B * C0 * N * C1 + 4 * B * N * C1,
        transcendentals=B * N,
        bytes_accessed=B * C0 * hw_padded * itemsize + weight_bytes
        + 4 * (B * C0 + B * C1),
    )

    kernel = functools.partial(convexnet_kernel, inv_hw=1.0 / HW,
                               num_nodes=N, c_out=C1, lane_chunks=tile // 128)

    pooled3, out3 = pl.pallas_call(
        kernel,
        out_shape=(jax.ShapeDtypeStruct((B, 1, C0), jnp.float32),
                   jax.ShapeDtypeStruct((B, 1, C1), jnp.float32)),
        grid_spec=pltpu.PrefetchScalarGridSpec(
            num_scalar_prefetch=0,
            grid=(B // bt, k_steps),
            in_specs=[
                pl.BlockSpec((bt, C0, tile), lambda b, k: (b, 0, k)),
                pl.BlockSpec((C0, N), lambda b, k: (0, 0)),
                pl.BlockSpec((1, N), lambda b, k: (0, 0)),
                pl.BlockSpec((C0, N * C1), lambda b, k: (0, 0)),
                pl.BlockSpec((1, N * C1), lambda b, k: (0, 0)),
            ],
            out_specs=[
                pl.BlockSpec((bt, 1, C0), lambda b, k: (b, 0, 0)),
                pl.BlockSpec((bt, 1, C1), lambda b, k: (b, 0, 0)),
            ],
            scratch_shapes=[pltpu.VMEM((bt, C0, 128), jnp.float32)],
        ),
        compiler_params=pltpu.CompilerParams(
            dimension_semantics=("parallel", "arbitrary"),
            vmem_limit_bytes=vmem_limit),
        cost_estimate=cost,
    )(x,                                              # native dtype, no wrapper cast
      w_env.astype(jnp.float32),
      b_env.reshape(1, N).astype(jnp.float32),
      wn_flat, bn_flat)

    # Match F.avg_pool2d(x, (H, W)) output shape [B, C0, 1, 1].
    return pooled3.reshape(B, C0, 1, 1), out3.reshape(B, C1)


def init_params(key, num_nodes, c_in, c_out):
    """Deterministic nn.Linear-style init: U(-1/sqrt(fan_in), 1/sqrt(fan_in))."""
    ks = jax.random.split(key, 4)
    bound = 1.0 / jnp.sqrt(c_in)
    # env_linear: nn.Linear(c_in, num_nodes); weight stored transposed [c_in, N].
    w_env = jax.random.uniform(ks[0], (c_in, num_nodes), jnp.float32, -bound, bound)
    b_env = jax.random.uniform(ks[1], (num_nodes,), jnp.float32, -bound, bound)
    # linears: num_nodes x nn.Linear(c_in, c_out); stored transposed [N, c_in, c_out].
    w_nodes = jax.random.uniform(ks[2], (num_nodes, c_in, c_out), jnp.float32, -bound, bound)
    b_nodes = jax.random.uniform(ks[3], (num_nodes, c_out), jnp.float32, -bound, bound)
    return w_env, b_env, w_nodes, b_nodes


def reference_forward(x_nchw, w_env, b_env, w_nodes, b_nodes):
    pooled = jnp.mean(x_nchw, axis=(2, 3))                       # [B, C0]
    logits = pooled @ w_env + b_env                              # [B, N]
    alpha = jax.nn.softmax(logits, axis=-1)                      # [B, N]
    node = jnp.einsum('bc,ncd->bnd', pooled, w_nodes) + b_nodes  # [B, N, C1]
    out = jnp.einsum('bn,bnd->bd', alpha, node)                  # [B, C1]
    return pooled.reshape(*pooled.shape, 1, 1), out


def _check(pooled, out, ref_pooled, ref_out):
    assert jnp.allclose(pooled, ref_pooled, atol=1e-5, rtol=1e-5)
    assert jnp.allclose(out, ref_out, atol=1e-3, rtol=1e-3)


if __name__ == "__main__":
    key = jax.random.PRNGKey(0)
    k_x, k_p, k_x2, k_p2 = jax.random.split(key, 4)

    # Config 1: channels = (32, 32), 4 nodes, 16x16 spatial.
    B, C0, H, W = 2, 32, 16, 16
    C1, N = 32, 4
    x = jax.random.normal(k_x, (B, C0, H, W), jnp.float32)
    w_env, b_env, w_nodes, b_nodes = init_params(k_p, N, C0, C1)
    ref_pooled, ref_out = reference_forward(x, w_env, b_env, w_nodes, b_nodes)

    # Auto tile selection (byte-based picker, per-chip VMEM budget).
    pooled, out = convexnet_forward(x, w_env, b_env, w_nodes, b_nodes)
    jax.block_until_ready((pooled, out))
    _check(pooled, out, ref_pooled, ref_out)

    # Forced hw_tile=128 -> 2 reduction steps per batch block, exercising the
    # accumulator init / finalize gating across the "arbitrary" grid axis.
    pooled, out = convexnet_forward(x, w_env, b_env, w_nodes, b_nodes, hw_tile=128)
    jax.block_until_ready((pooled, out))
    _check(pooled, out, ref_pooled, ref_out)

    # Config 2: HW not a multiple of 128 (10x10) -> exercises zero lane-padding.
    B2, C02, H2, W2 = 2, 16, 10, 10
    C12, N2 = 8, 3
    x2 = jax.random.normal(k_x2, (B2, C02, H2, W2), jnp.float32)
    p2 = init_params(k_p2, N2, C02, C12)
    pooled2, out2 = convexnet_forward(x2, *p2)
    jax.block_until_ready((pooled2, out2))
    ref_pooled2, ref_out2 = reference_forward(x2, *p2)
    _check(pooled2, out2, ref_pooled2, ref_out2)

    print("KERNEL_OK")
</pallas_src>

<mosaic_0001>
module attributes {stable_mosaic.version = 11 : i64} {
  func.func @convexnet_kernel(%arg0: i32, %arg1: i32, %arg2: memref<1x32x256xf32, #tpu.memory_space<vmem>>, %arg3: memref<32x4xf32, #tpu.memory_space<vmem>>, %arg4: memref<1x4xf32, #tpu.memory_space<vmem>>, %arg5: memref<32x128xf32, #tpu.memory_space<vmem>>, %arg6: memref<1x128xf32, #tpu.memory_space<vmem>>, %arg7: memref<1x1x32xf32, #tpu.memory_space<vmem>>, %arg8: memref<1x1x32xf32, #tpu.memory_space<vmem>>, %arg9: memref<1x32x128xf32, #tpu.memory_space<vmem>>) attributes {dimension_semantics = [#tpu.dimension_semantics<parallel>, #tpu.dimension_semantics<arbitrary>], iteration_bounds = array<i64: 2, 1>, scalar_prefetch = 0 : i64, scratch_operands = 1 : i64, tpu.core_type = #tpu.core_type<tc>, window_params = [{transform_indices = @transform_0, window_bounds = array<i64: 1, 32, 256>}, {pipeline_mode = #tpu.pipeline_mode<synchronous>, transform_indices = @transform_1, window_bounds = array<i64: 32, 4>}, {pipeline_mode = #tpu.pipeline_mode<synchronous>, transform_indices = @transform_2, window_bounds = array<i64: 1, 4>}, {pipeline_mode = #tpu.pipeline_mode<synchronous>, transform_indices = @transform_3, window_bounds = array<i64: 32, 128>}, {pipeline_mode = #tpu.pipeline_mode<synchronous>, transform_indices = @transform_4, window_bounds = array<i64: 1, 128>}, {transform_indices = @transform_5, window_bounds = array<i64: 1, 1, 32>}, {transform_indices = @transform_6, window_bounds = array<i64: 1, 1, 32>}]} {
    %c0_i32 = arith.constant 0 : i32
    %0 = arith.cmpi eq, %arg1, %c0_i32 : i32
    %1 = arith.extui %0 : i1 to i32
    %c0_i32_0 = arith.constant 0 : i32
    %2 = arith.cmpi ne, %1, %c0_i32_0 : i32
    scf.if %2 {
      %cst = arith.constant 0.000000e+00 : f32
      %13 = vector.broadcast %cst : f32 to vector<1x32x128xf32>
      %c0_11 = arith.constant 0 : index
      %c0_12 = arith.constant 0 : index
      %c0_13 = arith.constant 0 : index
      %14 = vector.load %arg9[%c0_11, %c0_12, %c0_13] : memref<1x32x128xf32, #tpu.memory_space<vmem>>, vector<1x32x128xf32>
      tpu.vector_store %arg9[%c0_11, %c0_12, %c0_13], %13 {strides = array<i32>} : memref<1x32x128xf32, #tpu.memory_space<vmem>>, vector<1x32x128xf32>,
    } else {
    }
    %c0 = arith.constant 0 : index
    %c0_1 = arith.constant 0 : index
    %c0_2 = arith.constant 0 : index
    %3 = vector.load %arg2[%c0, %c0_1, %c0_2] : memref<1x32x256xf32, #tpu.memory_space<vmem>>, vector<1x32x256xf32>
    %c0_3 = arith.constant 0 : index
    %c0_4 = arith.constant 0 : index
    %c0_5 = arith.constant 0 : index
    %4 = vector.load %arg9[%c0_3, %c0_4, %c0_5] : memref<1x32x128xf32, #tpu.memory_space<vmem>>, vector<1x32x128xf32>
    %5 = vector.extract_strided_slice %3 {offsets = [0, 0, 0], sizes = [1, 32, 128], strides = [1, 1, 1]} : vector<1x32x256xf32> to vector<1x32x128xf32>
    %6 = arith.addf %4, %5 : vector<1x32x128xf32>
    %7 = vector.extract_strided_slice %3 {offsets = [0, 0, 128], sizes = [1, 32, 128], strides = [1, 1, 1]} : vector<1x32x256xf32> to vector<1x32x128xf32>
    %8 = arith.addf %6, %7 : vector<1x32x128xf32>
    %c0_6 = arith.constant 0 : index
    %c0_7 = arith.constant 0 : index
    %c0_8 = arith.constant 0 : index
    %9 = vector.load %arg9[%c0_6, %c0_7, %c0_8] : memref<1x32x128xf32, #tpu.memory_space<vmem>>, vector<1x32x128xf32>
    tpu.vector_store %arg9[%c0_6, %c0_7, %c0_8], %8 {strides = array<i32>} : memref<1x32x128xf32, #tpu.memory_space<vmem>>, vector<1x32x128xf32>,
    %c0_i32_9 = arith.constant 0 : i32
    %10 = arith.cmpi eq, %arg1, %c0_i32_9 : i32
    %11 = arith.extui %10 : i1 to i32
    %c0_i32_10 = arith.constant 0 : i32
    %12 = arith.cmpi ne, %11, %c0_i32_10 : i32
    scf.if %12 {
      %c0_11 = arith.constant 0 : index
      %c0_12 = arith.constant 0 : index
      %c0_13 = arith.constant 0 : index
      %13 = vector.load %arg9[%c0_11, %c0_12, %c0_13] : memref<1x32x128xf32, #tpu.memory_space<vmem>>, vector<1x32x128xf32>
      %cst = arith.constant dense<0.000000e+00> : vector<1x32xf32>
      %14 = vector.multi_reduction <add>, %13, %cst [2] : vector<1x32x128xf32> to vector<1x32xf32>
      %cst_14 = arith.constant 3.906250e-03 : f32
      %15 = vector.broadcast %cst_14 : f32 to vector<1x32xf32>
      %16 = arith.mulf %14, %15 : vector<1x32xf32>
      %17 = vector.shape_cast %16 : vector<1x32xf32> to vector<1x1x32xf32>
      %c0_15 = arith.constant 0 : index
      %c0_16 = arith.constant 0 : index
      %c0_17 = arith.constant 0 : index
      %18 = vector.load %arg7[%c0_15, %c0_16, %c0_17] : memref<1x1x32xf32, #tpu.memory_space<vmem>>, vector<1x1x32xf32>
      tpu.vector_store %arg7[%c0_15, %c0_16, %c0_17], %17 {strides = array<i32>} : memref<1x1x32xf32, #tpu.memory_space<vmem>>, vector<1x1x32xf32>,
      %c0_18 = arith.constant 0 : index
      %c0_19 = arith.constant 0 : index
      %19 = vector.load %arg3[%c0_18, %c0_19] : memref<32x4xf32, #tpu.memory_space<vmem>>, vector<32x4xf32>
      %cst_20 = arith.constant dense<0.000000e+00> : vector<1x4xf32>
      %20 = tpu.matmul %16, %19, %cst_20 {dimension_numbers = #tpu.dot_dimension_numbers<[1], [0], [0], [1], [0, 0, 1, 1], [], []>} : vector<1x32xf32>, vector<32x4xf32>, vector<1x4xf32> -> vector<1x4xf32>
      %c0_21 = arith.constant 0 : index
      %c0_22 = arith.constant 0 : index
      %21 = vector.load %arg4[%c0_21, %c0_22] : memref<1x4xf32, #tpu.memory_space<vmem>>, vector<1x4xf32>
      %22 = arith.addf %20, %21 : vector<1x4xf32>
      %cst_23 = arith.constant dense<0xFF800000> : vector<1xf32>
      %23 = vector.multi_reduction <maximumf>, %22, %cst_23 [1] : vector<1x4xf32> to vector<1xf32>
      %24 = vector.shape_cast %23 : vector<1xf32> to vector<1x1xf32>
      %25 = vector.broadcast %24 : vector<1x1xf32> to vector<1x4xf32>
      %26 = arith.subf %22, %25 : vector<1x4xf32>
      %27 = math.exp %26 : vector<1x4xf32>
      %cst_24 = arith.constant dense<0.000000e+00> : vector<1xf32>
      %28 = vector.multi_reduction <add>, %27, %cst_24 [1] : vector<1x4xf32> to vector<1xf32>
      %29 = vector.shape_cast %28 : vector<1xf32> to vector<1x1xf32>
      %30 = vector.broadcast %29 : vector<1x1xf32> to vector<1x4xf32>
      %31 = arith.divf %27, %30 : vector<1x4xf32>
      %c0_25 = arith.constant 0 : index
      %c0_26 = arith.constant 0 : index
      %32 = vector.load %arg5[%c0_25, %c0_26] : memref<32x128xf32, #tpu.memory_space<vmem>>, vector<32x128xf32>
      %cst_27 = arith.constant dense<0.000000e+00> : vector<1x128xf32>
      %33 = tpu.matmul %16, %32, %cst_27 {dimension_numbers = #tpu.dot_dimension_numbers<[1], [0], [0], [1], [0, 0, 1, 1], [], []>} : vector<1x32xf32>, vector<32x128xf32>, vector<1x128xf32> -> vector<1x128xf32>
      %c0_28 = arith.constant 0 : index
      %c0_29 = arith.constant 0 : index
      %34 = vector.load %arg6[%c0_28, %c0_29] : memref<1x128xf32, #tpu.memory_space<vmem>>, vector<1x128xf32>
      %35 = arith.addf %33, %34 : vector<1x128xf32>
      %cst_30 = arith.constant 0.000000e+00 : f32
      %36 = vector.broadcast %cst_30 : f32 to vector<1x32xf32>
      %37 = vector.extract_strided_slice %31 {offsets = [0, 0], sizes = [1, 1], strides = [1, 1]} : vector<1x4xf32> to vector<1x1xf32>
      %38 = vector.extract_strided_slice %35 {offsets = [0, 0], sizes = [1, 32], strides = [1, 1]} : vector<1x128xf32> to vector<1x32xf32>
      %39 = vector.broadcast %37 : vector<1x1xf32> to vector<1x32xf32>
      %40 = arith.mulf %39, %38 : vector<1x32xf32>
      %41 = arith.addf %36, %40 : vector<1x32xf32>
      %42 = vector.extract_strided_slice %31 {offsets = [0, 1], sizes = [1, 1], strides = [1, 1]} : vector<1x4xf32> to vector<1x1xf32>
      %43 = vector.extract_strided_slice %35 {offsets = [0, 32], sizes = [1, 32], strides = [1, 1]} : vector<1x128xf32> to vector<1x32xf32>
      %44 = vector.broadcast %42 : vector<1x1xf32> to vector<1x32xf32>
      %45 = arith.mulf %44, %43 : vector<1x32xf32>
      %46 = arith.addf %41, %45 : vector<1x32xf32>
      %47 = vector.extract_strided_slice %31 {offsets = [0, 2], sizes = [1, 1], strides = [1, 1]} : vector<1x4xf32> to vector<1x1xf32>
      %48 = vector.extract_strided_slice %35 {offsets = [0, 64], sizes = [1, 32], strides = [1, 1]} : vector<1x128xf32> to vector<1x32xf32>
      %49 = vector.broadcast %47 : vector<1x1xf32> to vector<1x32xf32>
      %50 = arith.mulf %49, %48 : vector<1x32xf32>
      %51 = arith.addf %46, %50 : vector<1x32xf32>
      %52 = vector.extract_strided_slice %31 {offsets = [0, 3], sizes = [1, 1], strides = [1, 1]} : vector<1x4xf32> to vector<1x1xf32>
      %53 = vector.extract_strided_slice %35 {offsets = [0, 96], sizes = [1, 32], strides = [1, 1]} : vector<1x128xf32> to vector<1x32xf32>
      %54 = vector.broadcast %52 : vector<1x1xf32> to vector<1x32xf32>
      %55 = arith.mulf %54, %53 : vector<1x32xf32>
      %56 = arith.addf %51, %55 : vector<1x32xf32>
      %57 = vector.shape_cast %56 : vector<1x32xf32> to vector<1x1x32xf32>
      %c0_31 = arith.constant 0 : index
      %c0_32 = arith.constant 0 : index
      %c0_33 = arith.constant 0 : index
      %58 = vector.load %arg8[%c0_31, %c0_32, %c0_33] : memref<1x1x32xf32, #tpu.memory_space<vmem>>, vector<1x1x32xf32>
      tpu.vector_store %arg8[%c0_31, %c0_32, %c0_33], %57 {strides = array<i32>} : memref<1x1x32xf32, #tpu.memory_space<vmem>>, vector<1x1x32xf32>,
    } else {
    }
    return
  }
  func.func @transform_0(%arg0: i32, %arg1: i32) -> (i32, i32, i32) {
    %c0_i32 = arith.constant 0 : i32
    %c0_i32_0 = arith.constant 0 : i32
    return %arg0, %c0_i32, %arg1 : i32, i32, i32
  }
  func.func @transform_1(%arg0: i32, %arg1: i32) -> (i32, i32) {
    %c0_i32 = arith.constant 0 : i32
    %c0_i32_0 = arith.constant 0 : i32
    %c0_i32_1 = arith.constant 0 : i32
    return %c0_i32, %c0_i32_0 : i32, i32
  }
  func.func @transform_2(%arg0: i32, %arg1: i32) -> (i32, i32) {
    %c0_i32 = arith.constant 0 : i32
    %c0_i32_0 = arith.constant 0 : i32
    %c0_i32_1 = arith.constant 0 : i32
    return %c0_i32, %c0_i32_0 : i32, i32
  }
  func.func @transform_3(%arg0: i32, %arg1: i32) -> (i32, i32) {
    %c0_i32 = arith.constant 0 : i32
    %c0_i32_0 = arith.constant 0 : i32
    %c0_i32_1 = arith.constant 0 : i32
    return %c0_i32, %c0_i32_0 : i32, i32
  }
  func.func @transform_4(%arg0: i32, %arg1: i32) -> (i32, i32) {
    %c0_i32 = arith.constant 0 : i32
    %c0_i32_0 = arith.constant 0 : i32
    %c0_i32_1 = arith.constant 0 : i32
    return %c0_i32, %c0_i32_0 : i32, i32
  }
  func.func @transform_5(%arg0: i32, %arg1: i32) -> (i32, i32, i32) {
    %c0_i32 = arith.constant 0 : i32
    %c0_i32_0 = arith.constant 0 : i32
    %c0_i32_1 = arith.constant 0 : i32
    return %arg0, %c0_i32, %c0_i32_0 : i32, i32, i32
  }
  func.func @transform_6(%arg0: i32, %arg1: i32) -> (i32, i32, i32) {
    %c0_i32 = arith.constant 0 : i32
    %c0_i32_0 = arith.constant 0 : i32
    %c0_i32_1 = arith.constant 0 : i32
    return %arg0, %c0_i32, %c0_i32_0 : i32, i32, i32
  }
}

</mosaic_0001>

<bundles_post_ra>
// kernel: tpu_custom_call.1
= control target key start
LH: loop header
LB: loop body
LE: loop exit
PB: predicated region body
PF: predicated region fallthrough
CT: control target
= control target key end

     0   :  { %12 = vsyncpa [#allocation4], 0  ;;  %s1084_s0 = inlined_call_operand.hbm [shape: f32[2,32,256], index: 0, kind: input, shape index: {}]   ;;  %s1085_s1 = inlined_call_operand.vmem [shape: f32[32,4], index: 1, kind: input, shape index: {}]   ;;  %s1086_s2 = inlined_call_operand.vmem [shape: f32[1,4], index: 2, kind: input, shape index: {}]   ;;  %s1087_s3 = inlined_call_operand.vmem [shape: f32[32,128], index: 3, kind: input, shape index: {}]   ;;  %s1088_s4 = inlined_call_operand.vmem [shape: f32[1,128], index: 4, kind: input, shape index: {}]   ;;  %s1089_s5 = inlined_call_operand.hbm [shape: f32[2,1,32], index: 5, kind: output, shape index: {0}]   ;;  %s1090_s6 = inlined_call_operand.hbm [shape: f32[2,1,32], index: 6, kind: output, shape index: {1}]  }
   0x1   :  { %14 = vsyncpa [#allocation4 + $0x1], 0 }
   0x2   :  { %15 = vsyncpa [#allocation5], 0 }
   0x3   :  { %17 = vsyncpa [#allocation5 + $0x1], 0 }
   0x4   :  { %18 = vsyncpa [#allocation8], 0 }
   0x5   :  { %20 = vsyncpa [#allocation8 + $0x1], 0  ;;  %s911_s21 = smov 0   ;;  %s913_s22 = smov 0  }
   0x6   :  { %s915_s23 = smov 0   ;;  %s917_s24 = smov 0  }
   0x7   :  { %s919_s25 = smov 0   ;;  %s921_s26 = smov 0  }
   0x8 LB: > { %s622_s27 = sadd.s32 4294967295, %s865_s26   ;;  %s623_s28 = sadd.s32 4294967294, %s865_s26   ;;  %s865_s26 = sphi %s921_s26, %s26_s26   ;;  %s861_s25 = sphi %s919_s25, %s1102_s25   ;;  %s857_s24 = sphi %s917_s24, %s1101_s24   ;;  %s853_s23 = sphi %s915_s23, %s1100_s23   ;;  %s849_s22 = sphi %s913_s22, %s1099_s22   ;;  %s845_s21 = sphi %s911_s21, %s1098_s21  }
   0x9   : > { %s38_s29 = sadd.s32 1, %s861_s25  ;;  %s47_s30 = sadd.s32 1, %s853_s23 }
   0xa   : > { %p40_p0 = scmp.ge.s32.totalorder %s38_s29, 2  ;;  %p54_p1 = scmp.ne.s32.totalorder %s853_s23, %s849_s22 }
   0xb   : > { %p55_p2 = scmp.eq.s32.totalorder %s865_s26, 0  ;;  %p60_p3 = scmp.ne.s32.totalorder %s849_s22, %s845_s21 }
   0xc   : > { %s1104_s29 = smov (%p40_p0, %s38_s29), 0  ;;  %p61_p5 = scmp.eq.s32.totalorder %s622_s27, 0 }
   0xd   : > { %1092 = sst [smem:[#allocation12_spill]] %s1104_s29  ;;  %p952_p4 = por %p55_p2, %p54_p1 }
   0xe   : > { %s42_s8 = ssub.s32 %s861_s25, %s1104_s29  ;;  %p168_p6 = scmp.eq.s32.totalorder %s622_s27, 1 }
   0xf   : > { %p45_p7 = scmp.eq.s32.totalorder %s42_s8, 0  ;;  %p958_p8 = por %p61_p5, %p60_p3 }
  0x10   : > { %p962_p9 = por %p168_p6, %p54_p1  ;;  %p174_p10 = scmp.eq.s32.totalorder %s623_s28, 1 }
  0x11   : > { %s967_s11 = scalar_select %p45_p7, %s853_s23, %s47_s30  }
  0x12   : > { %p969_p11 = por %p174_p10, %p60_p3  ;;  %p625_p12 = scmp.ge.s32.totalorder %s865_s26, 2 }
  0x13   : > { %p653_p13 = scmp.lt.s32.totalorder %s865_s26, 2  ;;  %s232_s13 = sand.u32 1, %s853_s23  }
  0x14   : > { %s626_s14 = sshll.u32 %s232_s13, 6  ;;  %s635_s15 = sshll.u32 %s861_s25, 6 }
  0x15   : > { %s243_s18 = scalar_lea.hbm %s1084_s0, %s635_s15  ;;  %s236_s19 = scalar_lea.vmem [#allocation3], %s626_s14 }
  0x16   : > { %s246_s20 = sshll.u32 %s236_s19, 4  ;;  %s244_s27 = sshll.u32 %s243_s18, 4  ;;  %s247_s20 = int_to_ptr.vmem [resolvable:$true] %s246_s20  ;;  %s245_s27 = int_to_ptr.hbm [resolvable:$true] %s244_s27 }
  0x17   : > { %p643_p0 = pnand %p653_p13, %p952_p4  ;;  %p629_p1 = scmp.ge.s32.totalorder %s865_s26, 1 }
  0x18   : > { %s233_s28 = scalar_lea.sflag [#allocation4], %s232_s13  ;;  %s867_s30 = smov 256  }
  0x19   : > { %s868_s8 = smov 16   ;;  %p254_p2 = scmp.lt.s32.totalorder %s865_s26, 3 }
  0x1a   : > { %645 = dma.hbm_to_vmem [thread:$0]  (!%p643_p0), %s245_s27, 1024, %s247_s20, %s233_s28, %s867_s30, %s867_s30, %s868_s8  }
  0x1b   : > { %p255_p3 = pnand %p629_p1, %p254_p2 }
  0x1c   : > { %s985_s29 = sand.u32 (!%p255_p3), 1, %s849_s22  }
  0x1d   : > { %258 = sbr.rel (%p255_p3) target bundleno = 809 (0x329), region = 40  ;;  %s630_s14 = sshll.u32 (!%p255_p3), %s985_s29, 6 }
  0x1e   : > { %s261_s15 = scalar_lea.sflag (!%p255_p3), [#allocation4], %s985_s29  ;;  %s264_s16 = scalar_lea.vmem (!%p255_p3), [#allocation3], %s630_s14 }
  0x22   : > { %832 = dma.done.wait (%p958_p8), %s261_s15, 1024  }
  0x23   : > { %834 = vsyncadd (%p958_p8), %s261_s15, 4294966272  ;;  %v306_v0 = vld [vmem:[%s264_s16] sm:$0xff]  ;;  %v307_v1 = vld [vmem:[%s264_s16 + $0x8] sm:$0xff]  ;;  %v353_v20 = vlaneseq  ;;  %vm358_vm0 = vcmask 130112   ;;  %vm362_vm1 = vcmask 195712   ;;  %vm366_vm2 = vcmask 261312   ;;  %s500_s30 = scalar_lea.hbm %s1089_s5, %s857_s24 }
  0x24   : > { %v310_v2 = vld [vmem:[%s264_s16 + $0x20] sm:$0xff]  ;;  %v322_v3 = vadd.f32 %v307_v1, %v306_v0  ;;  %v311_v4 = vld [vmem:[%s264_s16 + $0x28] sm:$0xff]  ;;  %v308_v6 = vld [vmem:[%s264_s16 + $0x10] sm:$0xff]  ;;  %vm376_vm3 = vcmask 261120   ;;  %vm369_vm4 = vcmask 253952   ;;  %s290_s9 = scalar_lea.vmem [#allocation6], %s985_s29 }
  0x25   : > { %v324_v5 = vadd.f32 %v311_v4, %v310_v2  ;;  %v309_v7 = vld [vmem:[%s264_s16 + $0x18] sm:$0xff]  ;;  %v312_v8 = vld [vmem:[%s264_s16 + $0x30] sm:$0xff]  ;;  %v372_v16 = vld [vmem:[%s1085_s1 + $0x8] sm:$0xff]  ;;  %v354_v23 = vand.u32 127, %v353_v20  ;;  %vm399_vm5 = vcmask 24576   ;;  %v869_v49 = vmov 3  }
  0x26   : > { %337 = vadd.xlane.f32.xlu0 %v322_v3  ;;  %v313_v9 = vld [vmem:[%s264_s16 + $0x38] sm:$0xff]  ;;  %v323_v10 = vadd.f32 %v309_v7, %v308_v6  ;;  %v373_v14 = vld [vmem:[%s1085_s1 + $0x10] sm:$0xff]  ;;  %v425_v17 = vld [vmem:[%s1087_s3 + $0x8] sm:$0xff]  ;;  %714 = vset.pattern.permute.xlu2 %v869_v49  ;;  %v870_v50 = vmov 2   ;;  %v871_v51 = vmov 1   ;;  %v872_v0 = vmov 0  }
  0x27   : > { %341 = vadd.xlane.f32.xlu1 %v324_v5  ;;  %v325_v11 = vadd.f32 %v313_v9, %v312_v8  ;;  %v374_v12 = vld [vmem:[%s1085_s1 + $0x18] sm:$0xff]  ;;  %v426_v15 = vld [vmem:[%s1087_s3 + $0x10] sm:$0xff]  ;;  %v371_v18 = vld [vmem:[%s1085_s1] sm:$0xff]  ;;  %v356_v25 = vadd.s32 4294967288, %v354_v23  ;;  %v360_v26 = vadd.s32 4294967280, %v354_v23  ;;  %v364_v29 = vadd.s32 4294967272, %v354_v23  ;;  %712 = vset.pattern.permute.xlu0 %v871_v51 }
  0x28   : > { %v427_v13 = vld [vmem:[%s1087_s3 + $0x18] sm:$0xff]  ;;  %391 = vmatpush.msra.mxu0 %v374_v12  ;;  %v424_v19 = vld [vmem:[%s1087_s3] sm:$0xff]  ;;  %713 = vset.pattern.permute.xlu1 %v870_v50  ;;  %s502_s8 = sshll.u32 %s290_s9, 4  ;;  %s504_s14 = sshll.u32 %s500_s30, 4  ;;  %s503_s8 = int_to_ptr.vmem [resolvable:$true] %s502_s8  ;;  %s505_s14 = int_to_ptr.hbm [resolvable:$true] %s504_s14 }
  0x29   : > { %441 = vmatpush.msra.mxu1 %v427_v13  ;;  %v375_v40 = vld [vmem:[%s1086_s2] sm:$0x1]  ;;  %s488_s15 = scalar_lea.sflag [#allocation5], %s985_s29  ;;  %s765_s16 = sshra.s32 %s505_s14, 4  ;;  %s766_s16 = int_to_ptr.hbm [resolvable:$true] %s765_s16 }
  0x2a   : > { %392 = vmatpush.msra.mxu0 %v373_v14  ;;  %v428_v1 = vld [vmem:[%s1088_s4] sm:$0x1]  ;;  %s767_s7 = scalar_lea.hbm %s766_s16, 1  ;;  %s771_s18 = scalar_lea.hbm %s1089_s5, 2 }
  0x2b   : > { %442 = vmatpush.msra.mxu1 %v426_v15  ;;  %p768_p4 = scmp.ne.s32.totalorder %s766_s16, %s767_s7  ;;  %p772_p7 = scmp.lt.s32.totalorder %s766_s16, %s1089_s5 }
  0x2c   : > { %393 = vmatpush.msra.mxu0 %v372_v16  ;;  %p773_p8 = scmp.lt.s32.totalorder %s771_s18, %s767_s7 }
  0x2d   : > { %443 = vmatpush.msra.mxu1 %v425_v17  ;;  %p769_p5 = pnand %p768_p4, %p962_p9 }
  0x2e   : > { %339 = vadd.xlane.f32.xlu0 %v323_v10  ;;  %394 = vmatpush.msra.mxu0 %v371_v18  ;;  %p774_p10 = por %p773_p8, %p772_p7 }
  0x2f   : > { %343 = vadd.xlane.f32.xlu1 %v325_v11  ;;  %444 = vmatpush.msra.mxu1 %v424_v19  ;;  %p770_p6 = pneg %p769_p5 }
  0x31   : > { %p775_p13 = pnand %p774_p10, %p770_p6 }
  0x99   : > { %v338_v21 = vpop.xlane.xlu0 %337 }
  0x9a   : > { %v342_v22 = vpop.xlane.xlu1 %341  ;;  %v345_v24 = vmul.f32 0.00390625, %v338_v21 }
  0x9b   : > { %v347_v27 = vmul.f32 0.00390625, %v342_v22 }
  0x9c   : > { %v355_v33 = vperm.slane %v345_v24, %v354_v23 }
  0x9d   : > { %v361_v35 = vperm.slane %v347_v27, %v360_v26 }
  0xa1   : > { %v340_v28 = vpop.xlane.xlu0 %339 }
  0xa2   : > { %v346_v30 = vmul.f32 0.00390625, %v340_v28  ;;  %v344_v31 = vpop.xlane.xlu1 %343 }
  0xa3   : > { %v348_v32 = vmul.f32 0.00390625, %v344_v31 }
  0xa4   : > { %v357_v34 = vperm.slane %v346_v30, %v356_v25 }
  0xa5   : > { %v365_v36 = vperm.slane %v348_v32, %v364_v29 }
  0xa6   : > { %v359_v37 = vsel %vm358_vm0, %v357_v34, %v355_v33 }
  0xa7   : > { %v363_v38 = vsel %vm362_vm1, %v361_v35, %v359_v37 }
  0xa8   : > { %v367_v39 = vsel %vm366_vm2, %v365_v36, %v363_v38 }
  0xa9   : > { %631 = vmatmul.msk.f32.vlgmr.msra.gmra.mxu0 %vm376_vm3, %v367_v39  ;;  %632 = vmatmul.msk.f32.vlgmr.msra.gmra.mxu1 %vm376_vm3, %v367_v39  ;;  %370 = vst.msk [vmem:[%s290_s9] sm:$0x1] %vm369_vm4, %v367_v39 }
 0x126   : > { %v396_v41 = vpop.f32.mrf.mxu0  ;;  %v446_v2 = vpop.f32.mrf.mxu1 }
 0x127   : > { %v397_v42 = vadd.f32 %v396_v41, %v375_v40  ;;  %v447_v3 = vadd.f32 %v446_v2, %v428_v1 }
 0x129   : > { %v400_v43 = vsel %vm399_vm5, %v397_v42, -inf }
 0x12a   : > { %401 = vmax.xlane.f32.xlu2 %v400_v43 }
 0x19d   : > { %v402_v44 = vpop.xlane.xlu2 %401 }
 0x19e   : > { %v403_v45 = vsub.f32 %v397_v42, %v402_v44 }
 0x1a0   : > { %v404_v46 = vmul.f32 1.442695, %v403_v45 }
 0x1a2   : > { %717 = vpow2.f32 %v404_v46 }
 0x1a8   : > { %v718_v47 = vpop.eup %717 }
 0x1a9   : > { %v406_v48 = vsel %vm399_vm5, %v718_v47, 0.0 }
 0x1aa   : > { %407 = vadd.xlane.f32.xlu2 %v406_v48 }
 0x21d   : > { %v408_v52 = vpop.xlane.xlu2 %407 }
 0x21e   : > { %719 = vrcp.f32 %v408_v52  ;;  %v420_v56 = vand.u32 2147483648, %v408_v52  ;;  %v418_v58 = vand.u32 2147483647, %v408_v52  ;;  %vm414_vm7 = vweird.f32 %v408_v52 }
 0x220   : > { %v421_v60 = vor.u32 1.1754944e-38, %v420_v56  ;;  %vm419_vm9 = vcmp.eq.f32.partialorder %v418_v58, 8.507059e+37 }
 0x224   : > { %v720_v53 = vpop.eup %719 }
 0x225   : > { %v410_v54 = vmul.f32 %v720_v53, %v408_v52  ;;  %vm415_vm6 = vweird.f32 %v720_v53 }
 0x226   : > { %vm416_vm8 = vmor %vm414_vm7, %vm415_vm6 }
 0x227   : > { %v411_v55 = vsub.f32 1.0, %v410_v54 }
 0x229   : > { %v412_v57 = vmul.f32 %v720_v53, %v411_v55 }
 0x22b   : > { %v413_v59 = vadd.f32 %v720_v53, %v412_v57 }
 0x22d   : > { %v417_v61 = vsel %vm416_vm8, %v720_v53, %v413_v59 }
 0x22e   : > { %v422_v62 = vsel %vm419_vm9, %v421_v60, %v417_v61 }
 0x22f   : > { %v423_v63 = vmul.f32 %v718_v47, %v422_v62 }
 0x231   : > { %477 = vperm.xlu2 %714, %v423_v63   ;;  %467 = vperm.xlu1 %713, %v423_v63  }
 0x232   : > { %457 = vperm.xlu0 %712, %v423_v63  }
 0x239   : > { %715 = vset.pattern.permute.xlu2 %v872_v0 }
 0x23a   : > { %451 = vperm.xlu2 %715, %v423_v63   ;;  %716 = vset.pattern.permute.xlu0 %v869_v49 }
 0x2a3   : > { %v468_v4 = vpop.permute.xlu1 %467 }
 0x2a4   : > { %v470_v5 = vmul.f32 %v468_v4, %v447_v3  ;;  %v458_v6 = vpop.permute.xlu0 %457 }
 0x2a5   : > { %v460_v7 = vmul.f32 %v458_v6, %v447_v3 }
 0x2a6   : > { %778 = shalt.err (!%p775_p13)
}
 0x2a7   : > { %638 = dma.vmem_to_hbm [thread:$0]  (%p962_p9), %s503_s8, 16, %s505_s14, %s488_s15   ;;  %v478_v8 = vpop.permute.xlu2 %477 }
 0x2a8   : > { %s873_s20 = smov 64   ;;  %s874_s27 = smov 96   ;;  %v480_v9 = vmul.f32 %v478_v8, %v447_v3 }
 0x2a9   : > { %472 = vrot.lane.b32.xlu2 %v470_v5, %s873_s20  ;;  %462 = vrot.lane.b32.xlu1 %v460_v7, %s874_s27  ;;  %s875_s28 = smov 32   ;;  %s513_s7 = scalar_lea.hbm %s1090_s6, %s857_s24 }
 0x2aa   : > { %s296_s8 = scalar_lea.vmem [#allocation7], %s985_s29  ;;  %s517_s15 = sshll.u32 %s513_s7, 4  ;;  %s518_s15 = int_to_ptr.hbm [resolvable:$true] %s517_s15 }
 0x2ab   : > { %s515_s14 = sshll.u32 %s296_s8, 4  ;;  %s492_s13 = scalar_lea.sflag [#allocation8], %s985_s29  ;;  %s516_s14 = int_to_ptr.vmem [resolvable:$true] %s515_s14 }
 0x2ac   : > { %s793_s17 = sshra.s32 %s518_s15, 4  ;;  %s799_s9 = scalar_lea.hbm %s1090_s6, 2  ;;  %s794_s17 = int_to_ptr.hbm [resolvable:$true] %s793_s17 }
 0x2ad   : > { %s795_s18 = scalar_lea.hbm %s794_s17, 1  ;;  %p800_p3 = scmp.lt.s32.totalorder %s794_s17, %s1090_s6 }
 0x2ae   : > { %p796_p0 = scmp.ne.s32.totalorder %s794_s17, %s795_s18  ;;  %p801_p4 = scmp.lt.s32.totalorder %s799_s9, %s795_s18 }
 0x2af   : > { %v452_v10 = vpop.permute.xlu2 %451 }
 0x2b0   : > { %v454_v12 = vmul.f32 %v452_v10, %v447_v3  ;;  %p797_p1 = pnand %p796_p0, %p962_p9  ;;  %p802_p5 = por %p801_p4, %p800_p3 }
 0x2b1   : > { %482 = vrot.lane.b32.xlu1 %v480_v9, %s875_s28 }
 0x2b2   : > { %p798_p2 = pneg %p797_p1 }
 0x2b4   : > { %p803_p6 = pnand %p802_p5, %p798_p2 }
 0x303   : > { %v473_v14 = vpop.permute.xlu2 %472 }
 0x31b   : > { %v463_v11 = vpop.permute.xlu1 %462 }
 0x31c   : > { %v465_v13 = vadd.f32 %v463_v11, %v454_v12 }
 0x31e   : > { %v475_v15 = vadd.f32 %v473_v14, %v465_v13 }
 0x323   : > { %v483_v16 = vpop.permute.xlu1 %482 }
 0x324   : > { %v485_v17 = vadd.f32 %v483_v16, %v475_v15 }
 0x326   : > { %486 = vst.msk [vmem:[%s296_s8] sm:$0x1] %vm369_vm4, %v485_v17 }
 0x327   : > { %806 = shalt.err (!%p803_p6)
}
 0x328   : > { %639 = dma.vmem_to_hbm [thread:$0]  (%p962_p9), %s516_s14, 16, %s518_s15, %s492_s13  }
 0x329 PF: > { %s529_s29 = sand.u32 1, %s845_s21   ;;  %p647_p7 = pnand %p625_p12, %p969_p11 }
 0x32a   : > { %s530_s28 = scalar_lea.sflag [#allocation5], %s529_s29 }
 0x32b   : > { %p648_p8 = pneg %p647_p7 }
 0x32d   : > { %836 = dma.done.wait (%p648_p8), %s530_s28, 16  }
 0x32e   : > { %838 = vsyncadd (%p648_p8), %s530_s28, 4294967280  ;;  %s539_s30 = scalar_lea.sflag [#allocation8], %s529_s29 }
 0x32f   : > { %840 = dma.done.wait (%p648_p8), %s539_s30, 16  }
 0x330   : > { %842 = vsyncadd (%p648_p8), %s539_s30, 4294967280  ;;  %s26_s26 = sadd.s32 1, %s865_s26   ;;  %s1097_s10 = sld [smem:[#allocation12_spill]] }
 0x331   : > { %p23_p10 = scmp.ge.s32.totalorder %s26_s26, 4   ;;  %s1098_s21 = smov %s849_s22 }
 0x332   : > { %s1099_s22 = smov %s853_s23  ;;  %s1100_s23 = smov %s967_s11 }
 0x333   : > { %s1101_s24 = smov %s861_s25  ;;  %25 = sbr.rel (!%p23_p10) target bundleno = 8 (0x8), region = 110 }
 0x336   : > { %s1102_s25 = smov %s1097_s10 }
 0x338   :  { %544 = vsyncpa [#allocation4], 1 }
 0x339   :  { %546 = vsyncpa [#allocation4 + $0x1], 1 }
 0x33a   :  { %547 = vsyncpa [#allocation5], 1 }
 0x33b   :  { %549 = vsyncpa [#allocation5 + $0x1], 1 }
 0x33c   :  { %550 = vsyncpa [#allocation8], 1 }
 0x33d   :  { %552 = vsyncpa [#allocation8 + $0x1], 1 }

</bundles_post_ra>
